<compile_context>
chip_gen: v6e
topology: v6e:2x2x1
jax: 0.10.0
libtpu: 0.0.40
codegen_flags: <defaults>
</compile_context>

<pallas_src>
import jax
import jax.numpy as jnp
from jax.experimental import pallas as pl
from jax.experimental.pallas import tpu as pltpu


OUT_W = 128            # lane-dense output width: col 0 = Q1, col 1 = Q2, rest 0
MAX_TILE_B = 1024      # batch rows per grid step (upper bound)
SMALL_B_THRESHOLD = 128


def _round_up(x, m):
    return ((x + m - 1) // m) * m


def _cdiv(a, b):
    return -(-a // b)


def _elu(z):
    # PyTorch nn.ELU() default: alpha = 1.0.
    # TODO(synk): jnp.expm1 would be marginally more accurate near 0; keeping
    # exp(min(z,0))-1, the known-good Mosaic lowering path (the JAX reference
    # below uses the identical form, so parity holds).
    return jnp.where(z > 0, z, jnp.exp(jnp.minimum(z, 0.0)) - 1.0)


def critic_kernel(x_ref, w1_ref, b1_ref, w2_ref, b2_ref, w3_ref, b3_ref,
                  q_ref):
    """Fused dual-head critic: sin(x@W1+b1) -> ELU(.@W2+b2) -> .@W3+b3."""
    x = x_ref[...]                                         # (TILE_B, F)
    mxu_dtype = w1_ref.dtype                               # f32 or bf16

    # Layer 1, both heads fused: Linear(F -> Hp) + sin (f32 accumulate/bias).
    h1 = jnp.sin(
        jnp.dot(x, w1_ref[...], preferred_element_type=jnp.float32)
        + b1_ref[...])

    # Layer 2, block-diagonal Linear(Hp -> Hp) + ELU. Zero padding keeps the
    # two heads independent and the padded lanes exactly zero.
    z2 = (jnp.dot(h1.astype(mxu_dtype), w2_ref[...],
                  preferred_element_type=jnp.float32)
          + b2_ref[...])
    h2 = _elu(z2)

    # Layer 3: both H->1 heads as ONE lane-dense MXU matmul (Hp -> OUT_W).
    # Column 0 = Q1, column 1 = Q2, remaining lanes stay exactly zero.
    # Lane-dense (tile_b, 128) block -> unmasked vector stores.
    q_ref[...] = (jnp.dot(h2.astype(mxu_dtype), w3_ref[...],
                          preferred_element_type=jnp.float32)
                  + b3_ref[...])


def pack_params(params, hp, mxu_dtype=jnp.float32):
    """Pack stacked (Q1, Q2) params into fused, lane-padded matrices."""
    w1, b1 = params["w1"], params["b1"]      # (2, F, H), (2, 1, H)
    w2, b2 = params["w2"], params["b2"]      # (2, H, H), (2, 1, H)
    w3, b3 = params["w3"], params["b3"]      # (2, H, 1), (2, 1, 1)
    f, h = w1.shape[1], w1.shape[2]
    assert 2 * h <= hp

    w1p = jnp.zeros((f, hp), jnp.float32)
    w1p = w1p.at[:, :h].set(w1[0]).at[:, h:2 * h].set(w1[1])
    b1p = jnp.zeros((1, hp), jnp.float32)
    b1p = b1p.at[:, :h].set(b1[0]).at[:, h:2 * h].set(b1[1])

    w2p = jnp.zeros((hp, hp), jnp.float32)
    w2p = w2p.at[:h, :h].set(w2[0]).at[h:2 * h, h:2 * h].set(w2[1])
    b2p = jnp.zeros((1, hp), jnp.float32)
    b2p = b2p.at[:, :h].set(b2[0]).at[:, h:2 * h].set(b2[1])

    w3p = jnp.zeros((hp, OUT_W), jnp.float32)
    w3p = w3p.at[:h, 0].set(w3[0, :, 0]).at[h:2 * h, 1].set(w3[1, :, 0])
    b3p = jnp.zeros((1, OUT_W), jnp.float32)
    b3p = b3p.at[0, 0].set(b3[0, 0, 0]).at[0, 1].set(b3[1, 0, 0])

    w1p = w1p.astype(mxu_dtype)
    w2p = w2p.astype(mxu_dtype)
    w3p = w3p.astype(mxu_dtype)
    return w1p, b1p, w2p, b2p, w3p, b3p


def _choose_tile_b(b):
    """Largest batch tile that amortizes the ~0.35us/grid-step overhead.

    For B <= 512 use a single full-extent tile (block == array dims, always
    legal, no padding).  For larger B keep >= 2 tiles so the 'parallel' batch
    axis can shard across v7x's 2 TensorCores, each tile a multiple of 8
    (Pallas masks the partial boundary block)."""
    if b <= 512:
        return b
    n_tiles = max(2, _cdiv(b, MAX_TILE_B))
    return _round_up(_cdiv(b, n_tiles), 8)


def reference_forward(x, params):
    """Pure-JAX reference mirroring the PyTorch module ('basic_sin')."""
    def qnet(i):
        h1 = jnp.sin(x @ params["w1"][i] + params["b1"][i])
        z2 = h1 @ params["w2"][i] + params["b2"][i]
        h2 = jnp.where(z2 > 0, z2, jnp.exp(jnp.minimum(z2, 0.0)) - 1.0)
        return (jnp.sum(h2 * params["w3"][i][:, 0], axis=-1, keepdims=True)
                + params["b3"][i])
    return qnet(0), qnet(1)


def rff_sweep_critic_forward(x, params, *, use_bf16=False, use_pallas=None):
    """x: (B, F) float32. params: dict of stacked Q1/Q2 weights.

    Returns (q1, q2), each (B, 1) float32 — same as the PyTorch module.
    use_bf16:  cast x / weights to bf16 for the MXU matmuls (f32 accumulate).
    use_pallas: None = auto (kernel only when B > SMALL_B_THRESHOLD).
    """
    b, f = x.shape
    h = params["w1"].shape[2]

    if use_pallas is None:
        use_pallas = b > SMALL_B_THRESHOLD
    if not use_pallas:
        # Tiny batch: pallas_call dispatch overhead exceeds the whole math.
        return reference_forward(x, params)

    hp = _round_up(max(2 * h, 128), 128)       # fused + lane-padded hidden dim
    tile_b = _choose_tile_b(b)
    grid_b = _cdiv(b, tile_b)

    mxu_dtype = jnp.bfloat16 if use_bf16 else jnp.float32
    w1p, b1p, w2p, b2p, w3p, b3p = pack_params(params, hp, mxu_dtype)
    x_in = x.astype(mxu_dtype)

    q = pl.pallas_call(
        critic_kernel,
        out_shape=jax.ShapeDtypeStruct((b, OUT_W), jnp.float32),
        grid_spec=pltpu.PrefetchScalarGridSpec(
            num_scalar_prefetch=0,
            grid=(grid_b,),
            in_specs=[
                # x: tiled over the batch grid axis (boundary block masked).
                pl.BlockSpec((tile_b, f), lambda i: (i, 0)),
                # Packed weights / biases: constant block index -> stay
                # VMEM-resident across grid steps.
                pl.BlockSpec((f, hp), lambda i: (0, 0)),
                pl.BlockSpec((1, hp), lambda i: (0, 0)),
                pl.BlockSpec((hp, hp), lambda i: (0, 0)),
                pl.BlockSpec((1, hp), lambda i: (0, 0)),
                pl.BlockSpec((hp, OUT_W), lambda i: (0, 0)),
                pl.BlockSpec((1, OUT_W), lambda i: (0, 0)),
            ],
            # Lane-dense output block -> unmasked stores; wrapper slices [:, :2].
            out_specs=pl.BlockSpec((tile_b, OUT_W), lambda i: (i, 0)),
        ),
        compiler_params=pltpu.CompilerParams(
            # Batch tiles are independent -> v7x can shard them over 2 TCs.
            dimension_semantics=("parallel",),
        ),
    )(x_in, w1p, b1p, w2p, b2p, w3p, b3p)

    return q[:, 0:1], q[:, 1:2]


def init_params(key, feature_dim, hidden_dim):
    """Deterministic synthetic init (not a checkpoint load).
    Leading axis of size 2 stacks the Q1 / Q2 networks."""
    ks = jax.random.split(key, 6)
    s1 = 1.0 / jnp.sqrt(feature_dim)
    s2 = 1.0 / jnp.sqrt(hidden_dim)
    return {
        "w1": jax.random.uniform(ks[0], (2, feature_dim, hidden_dim),
                                 jnp.float32, -s1, s1),
        "b1": jax.random.uniform(ks[1], (2, 1, hidden_dim),
                                 jnp.float32, -s1, s1),
        "w2": jax.random.uniform(ks[2], (2, hidden_dim, hidden_dim),
                                 jnp.float32, -s2, s2),
        "b2": jax.random.uniform(ks[3], (2, 1, hidden_dim),
                                 jnp.float32, -s2, s2),
        "w3": jax.random.uniform(ks[4], (2, hidden_dim, 1),
                                 jnp.float32, -s2, s2),
        "b3": jax.random.uniform(ks[5], (2, 1, 1),
                                 jnp.float32, -s2, s2),
    }


if __name__ == "__main__":
    B, F, H = 8, 32, 32   # batch, critic_feed_feature_dim, hidden_dim
    key = jax.random.PRNGKey(0)
    k_x, k_p, k_x2, k_x3 = jax.random.split(key, 4)

    x = jax.random.normal(k_x, (B, F), jnp.float32)
    params = init_params(k_p, F, H)

    # Small batch, forced through the Pallas kernel (single full-extent tile).
    q1, q2 = rff_sweep_critic_forward(x, params, use_pallas=True)
    q1 = jax.block_until_ready(q1)
    q2 = jax.block_until_ready(q2)
    r1, r2 = reference_forward(x, params)
    assert q1.shape == (B, 1) and q2.shape == (B, 1)
    assert jnp.allclose(q1, r1, atol=1e-5, rtol=1e-5)
    assert jnp.allclose(q2, r2, atol=1e-5, rtol=1e-5)

    # Medium batch (not a multiple of 8): single full-extent tile, no jnp.pad.
    B2 = 300
    x2 = jax.random.normal(k_x2, (B2, F), jnp.float32)
    p1, p2 = rff_sweep_critic_forward(x2, params)
    p1 = jax.block_until_ready(p1)
    p2 = jax.block_until_ready(p2)
    s1, s2 = reference_forward(x2, params)
    assert p1.shape == (B2, 1) and p2.shape == (B2, 1)
    assert jnp.allclose(p1, s1, atol=1e-5, rtol=1e-5)
    assert jnp.allclose(p2, s2, atol=1e-5, rtol=1e-5)

    # Large batch: 2 grid steps with a masked partial boundary block.
    B3 = 1030
    x3 = jax.random.normal(k_x3, (B3, F), jnp.float32)
    g1, g2 = rff_sweep_critic_forward(x3, params)
    g1 = jax.block_until_ready(g1)
    g2 = jax.block_until_ready(g2)
    t1, t2 = reference_forward(x3, params)
    assert g1.shape == (B3, 1) and g2.shape == (B3, 1)
    assert jnp.allclose(g1, t1, atol=1e-5, rtol=1e-5)
    assert jnp.allclose(g2, t2, atol=1e-5, rtol=1e-5)

    # bf16 MXU data-path smoke test (gated; loose tolerance by design).
    c1, c2 = rff_sweep_critic_forward(x2, params, use_bf16=True)
    c1 = jax.block_until_ready(c1)
    c2 = jax.block_until_ready(c2)
    assert jnp.all(jnp.isfinite(c1)) and jnp.all(jnp.isfinite(c2))
    assert jnp.allclose(c1, s1, atol=1e-1, rtol=1e-1)
    assert jnp.allclose(c2, s2, atol=1e-1, rtol=1e-1)

    print("KERNEL_OK")
</pallas_src>

<mosaic_0001>
module attributes {stable_mosaic.version = 11 : i64} {
  func.func @critic_kernel(%arg0: i32, %arg1: memref<8x32xf32, #tpu.memory_space<vmem>>, %arg2: memref<32x128xf32, #tpu.memory_space<vmem>>, %arg3: memref<1x128xf32, #tpu.memory_space<vmem>>, %arg4: memref<128x128xf32, #tpu.memory_space<vmem>>, %arg5: memref<1x128xf32, #tpu.memory_space<vmem>>, %arg6: memref<128x128xf32, #tpu.memory_space<vmem>>, %arg7: memref<1x128xf32, #tpu.memory_space<vmem>>, %arg8: memref<8x128xf32, #tpu.memory_space<vmem>>) attributes {dimension_semantics = [#tpu.dimension_semantics<parallel>], iteration_bounds = array<i64: 1>, scalar_prefetch = 0 : i64, scratch_operands = 0 : i64, tpu.core_type = #tpu.core_type<tc>, window_params = [{transform_indices = @transform_0, window_bounds = array<i64: 8, 32>}, {pipeline_mode = #tpu.pipeline_mode<synchronous>, transform_indices = @transform_1, window_bounds = array<i64: 32, 128>}, {pipeline_mode = #tpu.pipeline_mode<synchronous>, transform_indices = @transform_2, window_bounds = array<i64: 1, 128>}, {pipeline_mode = #tpu.pipeline_mode<synchronous>, transform_indices = @transform_3, window_bounds = array<i64: 128, 128>}, {pipeline_mode = #tpu.pipeline_mode<synchronous>, transform_indices = @transform_4, window_bounds = array<i64: 1, 128>}, {pipeline_mode = #tpu.pipeline_mode<synchronous>, transform_indices = @transform_5, window_bounds = array<i64: 128, 128>}, {pipeline_mode = #tpu.pipeline_mode<synchronous>, transform_indices = @transform_6, window_bounds = array<i64: 1, 128>}, {transform_indices = @transform_7, window_bounds = array<i64: 8, 128>}]} {
    %c0 = arith.constant 0 : index
    %c0_0 = arith.constant 0 : index
    %0 = vector.load %arg1[%c0, %c0_0] : memref<8x32xf32, #tpu.memory_space<vmem>>, vector<8x32xf32>
    %c0_1 = arith.constant 0 : index
    %c0_2 = arith.constant 0 : index
    %1 = vector.load %arg2[%c0_1, %c0_2] : memref<32x128xf32, #tpu.memory_space<vmem>>, vector<32x128xf32>
    %cst = arith.constant dense<0.000000e+00> : vector<8x128xf32>
    %2 = tpu.matmul %0, %1, %cst {dimension_numbers = #tpu.dot_dimension_numbers<[1], [0], [0], [1], [0, 0, 1, 1], [], []>} : vector<8x32xf32>, vector<32x128xf32>, vector<8x128xf32> -> vector<8x128xf32>
    %c0_3 = arith.constant 0 : index
    %c0_4 = arith.constant 0 : index
    %3 = vector.load %arg3[%c0_3, %c0_4] : memref<1x128xf32, #tpu.memory_space<vmem>>, vector<1x128xf32>
    %4 = vector.broadcast %3 : vector<1x128xf32> to vector<8x128xf32>
    %5 = arith.addf %2, %4 : vector<8x128xf32>
    %6 = math.sin %5 : vector<8x128xf32>
    %c0_5 = arith.constant 0 : index
    %c0_6 = arith.constant 0 : index
    %7 = vector.load %arg4[%c0_5, %c0_6] : memref<128x128xf32, #tpu.memory_space<vmem>>, vector<128x128xf32>
    %cst_7 = arith.constant dense<0.000000e+00> : vector<8x128xf32>
    %8 = tpu.matmul %6, %7, %cst_7 {dimension_numbers = #tpu.dot_dimension_numbers<[1], [0], [0], [1], [0, 0, 1, 1], [], []>} : vector<8x128xf32>, vector<128x128xf32>, vector<8x128xf32> -> vector<8x128xf32>
    %c0_8 = arith.constant 0 : index
    %c0_9 = arith.constant 0 : index
    %9 = vector.load %arg5[%c0_8, %c0_9] : memref<1x128xf32, #tpu.memory_space<vmem>>, vector<1x128xf32>
    %10 = vector.broadcast %9 : vector<1x128xf32> to vector<8x128xf32>
    %11 = arith.addf %8, %10 : vector<8x128xf32>
    %cst_10 = arith.constant 0.000000e+00 : f32
    %12 = vector.broadcast %cst_10 : f32 to vector<8x128xf32>
    %13 = arith.cmpf ogt, %11, %12 : vector<8x128xf32>
    %cst_11 = arith.constant 0.000000e+00 : f32
    %14 = vector.broadcast %cst_11 : f32 to vector<8x128xf32>
    %15 = arith.minimumf %11, %14 : vector<8x128xf32>
    %16 = math.exp %15 : vector<8x128xf32>
    %cst_12 = arith.constant 1.000000e+00 : f32
    %17 = vector.broadcast %cst_12 : f32 to vector<8x128xf32>
    %18 = arith.subf %16, %17 : vector<8x128xf32>
    %19 = arith.select %13, %11, %18 : vector<8x128xi1>, vector<8x128xf32>
    %c0_13 = arith.constant 0 : index
    %c0_14 = arith.constant 0 : index
    %20 = vector.load %arg6[%c0_13, %c0_14] : memref<128x128xf32, #tpu.memory_space<vmem>>, vector<128x128xf32>
    %cst_15 = arith.constant dense<0.000000e+00> : vector<8x128xf32>
    %21 = tpu.matmul %19, %20, %cst_15 {dimension_numbers = #tpu.dot_dimension_numbers<[1], [0], [0], [1], [0, 0, 1, 1], [], []>} : vector<8x128xf32>, vector<128x128xf32>, vector<8x128xf32> -> vector<8x128xf32>
    %c0_16 = arith.constant 0 : index
    %c0_17 = arith.constant 0 : index
    %22 = vector.load %arg7[%c0_16, %c0_17] : memref<1x128xf32, #tpu.memory_space<vmem>>, vector<1x128xf32>
    %23 = vector.broadcast %22 : vector<1x128xf32> to vector<8x128xf32>
    %24 = arith.addf %21, %23 : vector<8x128xf32>
    %c0_18 = arith.constant 0 : index
    %c0_19 = arith.constant 0 : index
    %25 = vector.load %arg8[%c0_18, %c0_19] : memref<8x128xf32, #tpu.memory_space<vmem>>, vector<8x128xf32>
    tpu.vector_store %arg8[%c0_18, %c0_19], %24 {strides = array<i32>} : memref<8x128xf32, #tpu.memory_space<vmem>>, vector<8x128xf32>,
    return
  }
  func.func @transform_0(%arg0: i32) -> (i32, i32) {
    %c0_i32 = arith.constant 0 : i32
    %c0_i32_0 = arith.constant 0 : i32
    return %arg0, %c0_i32 : i32, i32
  }
  func.func @transform_1(%arg0: i32) -> (i32, i32) {
    %c0_i32 = arith.constant 0 : i32
    %c0_i32_0 = arith.constant 0 : i32
    %c0_i32_1 = arith.constant 0 : i32
    return %c0_i32, %c0_i32_0 : i32, i32
  }
  func.func @transform_2(%arg0: i32) -> (i32, i32) {
    %c0_i32 = arith.constant 0 : i32
    %c0_i32_0 = arith.constant 0 : i32
    %c0_i32_1 = arith.constant 0 : i32
    return %c0_i32, %c0_i32_0 : i32, i32
  }
  func.func @transform_3(%arg0: i32) -> (i32, i32) {
    %c0_i32 = arith.constant 0 : i32
    %c0_i32_0 = arith.constant 0 : i32
    %c0_i32_1 = arith.constant 0 : i32
    return %c0_i32, %c0_i32_0 : i32, i32
  }
  func.func @transform_4(%arg0: i32) -> (i32, i32) {
    %c0_i32 = arith.constant 0 : i32
    %c0_i32_0 = arith.constant 0 : i32
    %c0_i32_1 = arith.constant 0 : i32
    return %c0_i32, %c0_i32_0 : i32, i32
  }
  func.func @transform_5(%arg0: i32) -> (i32, i32) {
    %c0_i32 = arith.constant 0 : i32
    %c0_i32_0 = arith.constant 0 : i32
    %c0_i32_1 = arith.constant 0 : i32
    return %c0_i32, %c0_i32_0 : i32, i32
  }
  func.func @transform_6(%arg0: i32) -> (i32, i32) {
    %c0_i32 = arith.constant 0 : i32
    %c0_i32_0 = arith.constant 0 : i32
    %c0_i32_1 = arith.constant 0 : i32
    return %c0_i32, %c0_i32_0 : i32, i32
  }
  func.func @transform_7(%arg0: i32) -> (i32, i32) {
    %c0_i32 = arith.constant 0 : i32
    %c0_i32_0 = arith.constant 0 : i32
    return %arg0, %c0_i32 : i32, i32
  }
}

</mosaic_0001>

<bundles_post_ra>
// kernel: tpu_custom_call.1
= control target key start
LH: loop header
LB: loop body
LE: loop exit
PB: predicated region body
PF: predicated region fallthrough
CT: control target
= control target key end

     0   :  { %12 = vsyncpa [#allocation3], 0  ;;  %s893_s0 = inlined_call_operand.hbm [shape: f32[8,32], index: 0, kind: input, shape index: {}]   ;;  %s894_s1 = inlined_call_operand.hbm [shape: f32[32,128], index: 1, kind: input, shape index: {}]   ;;  %s895_s2 = inlined_call_operand.vmem [shape: f32[1,128], index: 2, kind: input, shape index: {}]   ;;  %s896_s3 = inlined_call_operand.hbm [shape: f32[128,128], index: 3, kind: input, shape index: {}]   ;;  %s897_s4 = inlined_call_operand.vmem [shape: f32[1,128], index: 4, kind: input, shape index: {}]   ;;  %s898_s5 = inlined_call_operand.hbm [shape: f32[128,128], index: 5, kind: input, shape index: {}]   ;;  %s899_s6 = inlined_call_operand.vmem [shape: f32[1,128], index: 6, kind: input, shape index: {}]   ;;  %s900_s7 = inlined_call_operand.hbm [shape: f32[8,128], index: 7, kind: output, shape index: {}]  }
   0x1   :  { %13 = vsyncpa [#allocation6], 0 }
   0x2   :  { %14 = vsyncpa [#allocation9], 0 }
   0x3   :  { %15 = vsyncpa [#allocation4], 0  ;;  %s742_s24 = smov [#allocation5]  }
   0x4   :  { %s31_s25 = sshll.u32 %s742_s24, 4  ;;  %s32_s25 = int_to_ptr.vmem [resolvable:$true] %s31_s25 }
   0x5   :  { %s642_s26 = scalar_lea.vmem %s32_s25, 512  ;;  %p647_p1 = scmp.lt.s32.totalorder %s32_s25, %s32_s25 }
   0x6   :  { %p643_p0 = scmp.ne.s32.totalorder %s32_s25, %s642_s26  ;;  %p648_p2 = scmp.lt.s32.totalorder %s642_s26, %s642_s26 }
   0x8   :  { %p649_p3 = por %p648_p2, %p647_p1 }
   0xa   :  { %p650_p4 = pnand %p649_p3, %p643_p0 }
   0xc   :  { %653 = shalt.err (!%p650_p4)
}
   0xd   :  { %s743_s27 = smov 128   ;;  %s744_s28 = smov 8  }
   0xe   :  { %37 = dma.hbm_to_vmem [thread:$0]  %s894_s1, 512, %s32_s25, [#allocation6], %s743_s27, %s743_s27, %s744_s28  }
   0xf   :  { %s745_s8 = smov [#allocation2]   ;;  %s746_s10 = smov [#allocation7]  }
  0x10   :  { %s22_s9 = sshll.u32 %s745_s8, 4  ;;  %s45_s11 = sshll.u32 %s746_s10, 4  ;;  %s23_s9 = int_to_ptr.vmem [resolvable:$true] %s22_s9  ;;  %s46_s11 = int_to_ptr.vmem [resolvable:$true] %s45_s11 }
  0x11   :  { %s662_s12 = scalar_lea.vmem %s23_s9, 128  ;;  %p667_p6 = scmp.lt.s32.totalorder %s23_s9, %s23_s9 }
  0x12   :  { %p663_p5 = scmp.ne.s32.totalorder %s23_s9, %s662_s12  ;;  %p668_p7 = scmp.lt.s32.totalorder %s662_s12, %s662_s12 }
  0x14   :  { %p669_p8 = por %p668_p7, %p667_p6 }
  0x16   :  { %p670_p9 = pnand %p669_p8, %p663_p5 }
  0x18   :  { %673 = shalt.err (!%p670_p9)
}
  0x19   :  { %25 = dma.hbm_to_vmem [thread:$0]  %s893_s0, 128, %s23_s9, [#allocation3]  }
  0x1a   :  { %s682_s15 = scalar_lea.vmem %s46_s11, 2048  ;;  %p687_p11 = scmp.lt.s32.totalorder %s46_s11, %s46_s11 }
  0x1b   :  { %p683_p10 = scmp.ne.s32.totalorder %s46_s11, %s682_s15  ;;  %p688_p12 = scmp.lt.s32.totalorder %s682_s15, %s682_s15 }
  0x1d   :  { %p689_p13 = por %p688_p12, %p687_p11 }
  0x1f   :  { %p690_p0 = pnand %p689_p13, %p683_p10 }
  0x21   :  { %693 = shalt.err (!%p690_p0)
}
  0x22   :  { %51 = dma.hbm_to_vmem [thread:$0]  %s896_s3, 2048, %s46_s11, [#allocation6], %s743_s27, %s743_s27, %s744_s28  }
  0x23   :  { %s747_s17 = smov [#allocation8]  }
  0x24   :  { %s59_s18 = sshll.u32 %s747_s17, 4  ;;  %s60_s18 = int_to_ptr.vmem [resolvable:$true] %s59_s18 }
  0x25   :  { %s702_s19 = scalar_lea.vmem %s60_s18, 2048  ;;  %p707_p2 = scmp.lt.s32.totalorder %s60_s18, %s60_s18 }
  0x26   :  { %p703_p1 = scmp.ne.s32.totalorder %s60_s18, %s702_s19  ;;  %p708_p3 = scmp.lt.s32.totalorder %s702_s19, %s702_s19 }
  0x28   :  { %p709_p4 = por %p708_p3, %p707_p2 }
  0x2a   :  { %p710_p5 = pnand %p709_p4, %p703_p1 }
  0x2c   :  { %713 = shalt.err (!%p710_p5)
}
  0x2d   :  { %65 = dma.hbm_to_vmem [thread:$0]  %s898_s5, 2048, %s60_s18, [#allocation9], %s743_s27, %s743_s27, %s744_s28  }
  0x2e   :  { %734 = dma.done.wait [#allocation3], 128  }
  0x2f   :  { %735 = vsyncadd [#allocation3], 4294967168 }
  0x30   :  { %736 = dma.done.wait [#allocation6], 2560  }
  0x31   :  { %737 = vsyncadd [#allocation6], 4294964736 }
  0x32   :  { %738 = dma.done.wait [#allocation9], 2048  }
  0x33   :  { %739 = vsyncadd [#allocation9], 4294965248  ;;  %v748_v0 = vmov 0.0   ;;  %vm749_vm0 = vmmov 0   ;;  %v84_v1 = vld [vmem:[#allocation5 + $0x18] sm:$0xff]  ;;  %v83_v2 = vld [vmem:[#allocation5 + $0x10] sm:$0xff] }
  0x34   :  { %528 = vmatprep.subr.mxu0 %v748_v0  ;;  %536 = vmatprep.mubr.msk.f32.mxu0 %vm749_vm0, %v748_v0  ;;  %v82_v3 = vld [vmem:[#allocation5 + $0x8] sm:$0xff]  ;;  %v81_v4 = vld [vmem:[#allocation5] sm:$0xff]  ;;  %v80_v5 = vld [vmem:[#allocation2] sm:$0xff]  ;;  %vm92_vm1 = vcmask 261120   ;;  %v750_v40 = vmov 683565275  }
  0x35   :  { %539 = vmatprep.subr.mxu1 %v748_v0  ;;  %571 = vmatprep.mubr.msk.f32.mxu1 %vm749_vm0, %v748_v0  ;;  %v285_v6 = vld [vmem:[#allocation7 + $0x78] sm:$0xff]  ;;  %v284_v7 = vld [vmem:[#allocation7 + $0x70] sm:$0xff]  ;;  %v283_v8 = vld [vmem:[#allocation7 + $0x68] sm:$0xff]  ;;  %v751_v42 = vmov 2475754826   ;;  %s756_s24 = smov [#allocation10]  }
  0x36   :  { %529 = vmatpush3.msra.mxu0 %v84_v1  ;;  %540 = vmatpush3.msra.mxu1 %v285_v6  ;;  %v282_v9 = vld [vmem:[#allocation7 + $0x60] sm:$0xff]  ;;  %v281_v10 = vld [vmem:[#allocation7 + $0x58] sm:$0xff]  ;;  %v280_v11 = vld [vmem:[#allocation7 + $0x50] sm:$0xff]  ;;  %v752_v45 = vmov 2131351028   ;;  %s469_s25 = sshll.u32 %s756_s24, 4  ;;  %s470_s25 = int_to_ptr.vmem [resolvable:$true] %s469_s25 }
  0x37   :  { %530 = vmatprep.subr.mxu0 %v748_v0  ;;  %541 = vmatprep.subr.mxu1 %v748_v0  ;;  %v279_v12 = vld [vmem:[#allocation7 + $0x48] sm:$0xff]  ;;  %v278_v13 = vld [vmem:[#allocation7 + $0x40] sm:$0xff]  ;;  %v277_v14 = vld [vmem:[#allocation7 + $0x38] sm:$0xff]  ;;  %v753_v48 = vmov 2102212464   ;;  %p719_p7 = scmp.lt.s32.totalorder %s470_s25, %s470_s25 }
  0x38   :  { %531 = vmatpush3.msra.mxu0 %v83_v2  ;;  %542 = vmatpush3.msra.mxu1 %v284_v7  ;;  %v276_v15 = vld [vmem:[#allocation7 + $0x30] sm:$0xff]  ;;  %v275_v16 = vld [vmem:[#allocation7 + $0x28] sm:$0xff]  ;;  %v274_v17 = vld [vmem:[#allocation7 + $0x20] sm:$0xff]  ;;  %v754_v51 = vmov 920167782  }
  0x39   :  { %532 = vmatprep.subr.mxu0 %v748_v0  ;;  %543 = vmatprep.subr.mxu1 %v748_v0  ;;  %v273_v18 = vld [vmem:[#allocation7 + $0x18] sm:$0xff]  ;;  %v272_v19 = vld [vmem:[#allocation7 + $0x10] sm:$0xff]  ;;  %v271_v20 = vld [vmem:[#allocation7 + $0x8] sm:$0xff]  ;;  %v755_v54 = vmov 1326507024  }
  0x3a   :  { %533 = vmatpush3.msra.mxu0 %v82_v3  ;;  %544 = vmatpush3.msra.mxu1 %v283_v8  ;;  %v270_v21 = vld [vmem:[#allocation7] sm:$0xff]  ;;  %v384_v22 = vld [vmem:[#allocation8 + $0x78] sm:$0xff]  ;;  %v383_v23 = vld [vmem:[#allocation8 + $0x70] sm:$0xff] }
  0x3b   :  { %534 = vmatprep.subr.mxu0 %v748_v0  ;;  %545 = vmatprep.subr.mxu1 %v748_v0  ;;  %v382_v24 = vld [vmem:[#allocation8 + $0x68] sm:$0xff]  ;;  %v381_v25 = vld [vmem:[#allocation8 + $0x60] sm:$0xff]  ;;  %v480_v26 = vld [vmem:[%s895_s2] ss:$0 sm:$0xff] }
  0x3c   :  { %535 = vmatpush3.msra.mxu0 %v81_v4  ;;  %546 = vmatpush3.msra.mxu1 %v282_v9 }
  0x3d   :  { %537 = vmatmul.mubr.msk.f32.vlgmr.msra.gmra.mxu0 %vm92_vm1, %v80_v5  ;;  %574 = vmatprep.subr.mxu0 %v748_v0 }
  0x3e   :  { %606 = vmatprep.mubr.msk.f32.mxu0 %vm749_vm0, %v748_v0  ;;  %547 = vmatprep.subr.mxu1 %v748_v0 }
  0x3f   :  { %548 = vmatpush3.msra.mxu1 %v281_v10  ;;  %575 = vmatpush3.msra.mxu0 %v384_v22 }
  0x40   :  { %549 = vmatprep.subr.mxu1 %v748_v0  ;;  %576 = vmatprep.subr.mxu0 %v748_v0 }
  0x41   :  { %550 = vmatpush3.msra.mxu1 %v280_v11  ;;  %577 = vmatpush3.msra.mxu0 %v383_v23 }
  0x42   :  { %551 = vmatprep.subr.mxu1 %v748_v0  ;;  %578 = vmatprep.subr.mxu0 %v748_v0 }
  0x43   :  { %552 = vmatpush3.msra.mxu1 %v279_v12  ;;  %579 = vmatpush3.msra.mxu0 %v382_v24 }
  0x44   :  { %553 = vmatprep.subr.mxu1 %v748_v0  ;;  %580 = vmatprep.subr.mxu0 %v748_v0 }
  0x45   :  { %554 = vmatpush3.msra.mxu1 %v278_v13  ;;  %581 = vmatpush3.msra.mxu0 %v381_v25 }
  0x46   :  { %555 = vmatprep.subr.mxu1 %v748_v0  ;;  %582 = vmatprep.subr.mxu0 %v748_v0 }
  0x47   :  { %556 = vmatpush3.msra.mxu1 %v277_v14 }
  0x48   :  { %557 = vmatprep.subr.mxu1 %v748_v0 }
  0x49   :  { %558 = vmatpush3.msra.mxu1 %v276_v15 }
  0x4a   :  { %559 = vmatprep.subr.mxu1 %v748_v0 }
  0x4b   :  { %560 = vmatpush3.msra.mxu1 %v275_v16 }
  0x4c   :  { %561 = vmatprep.subr.mxu1 %v748_v0 }
  0x4d   :  { %562 = vmatpush3.msra.mxu1 %v274_v17 }
  0x4e   :  { %563 = vmatprep.subr.mxu1 %v748_v0 }
  0x4f   :  { %564 = vmatpush3.msra.mxu1 %v273_v18 }
  0x50   :  { %565 = vmatprep.subr.mxu1 %v748_v0 }
  0x51   :  { %566 = vmatpush3.msra.mxu1 %v272_v19 }
  0x52   :  { %567 = vmatprep.subr.mxu1 %v748_v0 }
  0x53   :  { %568 = vmatpush3.msra.mxu1 %v271_v20 }
  0x54   :  { %569 = vmatprep.subr.mxu1 %v748_v0 }
  0x55   :  { %570 = vmatpush3.msra.mxu1 %v270_v21 }
  0xfd   :  { %v162_v27 = vpop.f32.mrf.mxu0 }
  0xfe   :  { %v852_v28 = vadd.f32 %v480_v26, %v162_v27 }
  0xff   :  { %v538_v29 = vpop.f32.mrf.mxu0 }
 0x100   :  { %v169_v30 = vand.u32 2139095040, %v852_v28  ;;  %v166_v34 = vand.u32 2147483647, %v852_v28  ;;  %vm168_vm9 = vcmp.lt.s32.totalorder %v852_v28, 0  ;;  %vm258_vm14 = vweird.f32 %v852_v28 }
 0x102   :  { %v170_v31 = vshrl.u32 %v169_v30, 23  ;;  %v173_v37 = vand.u32 8388607, %v166_v34  ;;  %vm167_vm10 = vcmp.le.f32.partialorder %v166_v34, 0.7853982 }
 0x104   :  { %v482_v32 = vadd.s32 4294967169, %v170_v31  ;;  %v174_v56 = vor.u32 8388608, %v173_v37 }
 0x106   :  { %v176_v33 = vadd.s32 1, %v482_v32  ;;  %v214_v7 = vshll.u32 %v174_v56, 8 }
 0x108   :  { %vm177_vm2 = vcmp.gt.s32.totalorder %v176_v33, 0 }
 0x109   :  { %v178_v35 = vsel %vm177_vm2, %v176_v33, 0 }
 0x10a   :  { %v180_v36 = vand.u32 31, %v178_v35  ;;  %v179_v39 = vshrl.u32 %v178_v35, 5 }
 0x10c   :  { %v181_v38 = vsub.s32 32, %v180_v36  ;;  %v183_v41 = vshll.u32 %v750_v40, %v180_v36  ;;  %v186_v43 = vshll.u32 %v751_v42, %v180_v36  ;;  %v189_v47 = vshll.u32 %v752_v45, %v180_v36 }
 0x10d   :  { %v192_v50 = vshll.u32 %v753_v48, %v180_v36  ;;  %v195_v53 = vshll.u32 %v754_v51, %v180_v36  ;;  %vm198_vm3 = vcmp.lt.s32.totalorder %v179_v39, 1  ;;  %vm201_vm4 = vcmp.lt.s32.totalorder %v179_v39, 4 }
 0x10e   :  { %v184_v44 = vshrl.u32 %v751_v42, %v181_v38  ;;  %v187_v46 = vshrl.u32 %v752_v45, %v181_v38  ;;  %v190_v49 = vshrl.u32 %v753_v48, %v181_v38  ;;  %v193_v52 = vshrl.u32 %v754_v51, %v181_v38 }
 0x10f   :  { %v196_v55 = vshrl.u32 %v755_v54, %v181_v38  ;;  %v182_v2 = vshrl.u32 %v750_v40, %v181_v38  ;;  %vm200_vm5 = vcmp.lt.s32.totalorder %v179_v39, 3  ;;  %vm199_vm6 = vcmp.lt.s32.totalorder %v179_v39, 2 }
 0x110   :  { %v185_v57 = vor.u32 %v184_v44, %v183_v41  ;;  %v188_v58 = vor.u32 %v187_v46, %v186_v43  ;;  %v191_v59 = vor.u32 %v190_v49, %v189_v47  ;;  %v194_v60 = vor.u32 %v193_v52, %v192_v50 }
 0x111   :  { %v197_v61 = vor.u32 %v196_v55, %v195_v53 }
 0x112   :  { %v203_v62 = vsel %vm201_vm4, %v191_v59, 2102212464  ;;  %v206_v63 = vsel %vm198_vm3, %v185_v57, %v188_v58  ;;  %v210_v1 = vsel %vm198_vm3, %v188_v58, %v191_v59  ;;  %v207_v3 = vsel %vm201_vm4, %v194_v60, 920167782 }
 0x113   :  { %v211_v4 = vsel %vm201_vm4, %v197_v61, 1326507024  ;;  %v208_v5 = vsel %vm200_vm5, %v191_v59, %v207_v3  ;;  %v202_v8 = vsel %vm198_vm3, %v182_v2, %v185_v57  ;;  %v204_v9 = vsel %vm200_vm5, %v188_v58, %v203_v62  ;;  %v380_v59 = vld [vmem:[#allocation8 + $0x58] sm:$0xff]  ;;  %v378_v61 = vld [vmem:[#allocation8 + $0x48] sm:$0xff]  ;;  %v377_v62 = vld [vmem:[#allocation8 + $0x40] sm:$0xff] }
 0x114   :  { %v212_v6 = vsel %vm200_vm5, %v194_v60, %v211_v4  ;;  %v209_v10 = vsel %vm199_vm6, %v206_v63, %v208_v5  ;;  %v205_v16 = vsel %vm199_vm6, %v202_v8, %v204_v9  ;;  %583 = vmatpush3.msra.mxu0 %v380_v59  ;;  %v379_v60 = vld [vmem:[#allocation8 + $0x50] sm:$0xff]  ;;  %v376_v63 = vld [vmem:[#allocation8 + $0x38] sm:$0xff]  ;;  %v373_v2 = vld [vmem:[#allocation8 + $0x20] sm:$0xff] }
 0x115   :  { %v213_v11 = vsel %vm199_vm6, %v210_v1, %v212_v6  ;;  %v861_v14 = vmul.u32.u64.low %v214_v7, %v209_v10  ;;  %v862_v15 = vmul.u32.u64.high %v214_v7, %v209_v10, %v861_v14  ;;  %v221_v18 = vmul.u32 %v214_v7, %v205_v16  ;;  %584 = vmatprep.subr.mxu0 %v748_v0  ;;  %v374_v1 = vld [vmem:[#allocation8 + $0x28] sm:$0xff]  ;;  %v372_v3 = vld [vmem:[#allocation8 + $0x18] sm:$0xff]  ;;  %v371_v4 = vld [vmem:[#allocation8 + $0x10] sm:$0xff] }
 0x116   :  { %v858_v12 = vmul.u32.u64.low %v214_v7, %v213_v11  ;;  %v859_v13 = vmul.u32.u64.high %v214_v7, %v213_v11, %v858_v12  ;;  %585 = vmatpush3.msra.mxu0 %v379_v60  ;;  %v370_v5 = vld [vmem:[#allocation8 + $0x8] sm:$0xff]  ;;  %v369_v6 = vld [vmem:[#allocation8] sm:$0xff]  ;;  %v486_v7 = vld [vmem:[%s897_s4] ss:$0 sm:$0xff]  ;;  %s714_s4 = scalar_lea.vmem %s470_s25, 128 }
 0x117   :  { %v224_v17 = vadd.s32 1, %v862_v15  ;;  %586 = vmatprep.subr.mxu0 %v748_v0  ;;  %p715_p6 = scmp.ne.s32.totalorder %s470_s25, %s714_s4  ;;  %p720_p8 = scmp.lt.s32.totalorder %s714_s4, %s714_s4 }
 0x118   :  { %vm223_vm7 = vc.u32 %v859_v13, %v861_v14  ;;  %v222_v31 = vadd.s32 %v861_v14, %v859_v13  ;;  %587 = vmatpush3.msra.mxu0 %v378_v61 }
 0x119   :  { %v225_v19 = vsel %vm223_vm7, %v224_v17, %v862_v15  ;;  %588 = vmatprep.subr.mxu0 %v748_v0  ;;  %p721_p9 = por %p720_p8, %p719_p7 }
 0x11a   :  { %v226_v20 = vadd.s32 %v225_v19, %v221_v18  ;;  %589 = vmatpush3.msra.mxu0 %v377_v62 }
 0x11b   :  { %590 = vmatprep.subr.mxu0 %v748_v0  ;;  %p722_p10 = pnand %p721_p9, %p715_p6 }
 0x11c   :  { %v227_v21 = vadd.s32 536870912, %v226_v20  ;;  %591 = vmatpush3.msra.mxu0 %v376_v63 }
 0x11d   :  { %592 = vmatprep.subr.mxu0 %v748_v0 }
 0x11e   :  { %v228_v22 = vshrl.u32 %v227_v21, 30 }
 0x120   :  { %v229_v23 = vshll.u32 %v228_v22, 30  ;;  %v252_v45 = vsub.s32 4, %v228_v22 }
 0x122   :  { %v230_v24 = vsub.s32 %v226_v20, %v229_v23  ;;  %v253_v48 = vsel %vm168_vm9, %v252_v45, %v228_v22 }
 0x123   :  { %v255_v49 = vsel %vm167_vm10, 0, %v253_v48 }
 0x124   :  { %v232_v25 = vsub.s32 0, %v230_v24  ;;  %v259_v50 = vadd.s32 3, %v255_v49 }
 0x126   :  { %v483_v26 = vmin.u32 %v232_v25, %v230_v24  ;;  %v260_v51 = vand.u32 3, %v259_v50 }
 0x128   :  { %v234_v27 = vclz %v483_v26  ;;  %vm265_vm11 = vcmp.eq.s32.totalorder %v260_v51, 2  ;;  %vm262_vm12 = vcmp.eq.s32.totalorder %v260_v51, 0  ;;  %vm261_vm13 = vcmp.lt.s32.totalorder %v260_v51, 2 }
 0x12a   :  { %v484_v29 = vadd.s32 4294967294, %v234_v27 }
 0x12c   :  { %vm485_vm8 = vcmp.lt.s32.totalorder %v484_v29, 0 }
 0x12d   :  { %v237_v30 = vsel %vm485_vm8, 0, %v484_v29 }
 0x12e   :  { %v238_v32 = vsub.s32 32, %v237_v30  ;;  %v242_v33 = vsub.s32 4294967266, %v237_v30  ;;  %v239_v35 = vshll.u32 %v230_v24, %v237_v30 }
 0x130   :  { %v240_v36 = vshrl.u32 %v222_v31, %v238_v32  ;;  %v243_v37 = vadd.s32 127, %v242_v33 }
 0x132   :  { %v241_v38 = vor.u32 %v240_v36, %v239_v35  ;;  %v244_v39 = vshll.u32 %v243_v37, 23 }
 0x134   :  { %v245_v40 = vor.u32 4788187, %v244_v39  ;;  %v248_v42 = vcvt.s32.f32 %v241_v38 }
 0x136   :  { %v246_v41 = vand.u32 2147483647, %v245_v40 }
 0x138   :  { %v249_v43 = vmul.f32 %v248_v42, %v246_v41 }
 0x13a   :  { %v250_v44 = vxor.u32 2147483648, %v249_v43 }
 0x13c   :  { %v251_v46 = vsel %vm168_vm9, %v250_v44, %v249_v43 }
 0x13d   :  { %v254_v47 = vsel %vm167_vm10, %v852_v28, %v251_v46  ;;  %v375_v28 = vld [vmem:[#allocation8 + $0x30] sm:$0xff] }
 0x13e   :  { %628 = vcosq.f32 %v254_v47  ;;  %593 = vmatpush3.msra.mxu0 %v375_v28 }
 0x13f   :  { %630 = vsinq.f32 %v254_v47  ;;  %594 = vmatprep.subr.mxu0 %v748_v0 }
 0x140   :  { %595 = vmatpush3.msra.mxu0 %v374_v1 }
 0x141   :  { %596 = vmatprep.subr.mxu0 %v748_v0 }
 0x142   :  { %597 = vmatpush3.msra.mxu0 %v373_v2 }
 0x143   :  { %598 = vmatprep.subr.mxu0 %v748_v0 }
 0x144   :  { %599 = vmatpush3.msra.mxu0 %v372_v3 }
 0x145   :  { %600 = vmatprep.subr.mxu0 %v748_v0 }
 0x146   :  { %601 = vmatpush3.msra.mxu0 %v371_v4 }
 0x147   :  { %602 = vmatprep.subr.mxu0 %v748_v0 }
 0x148   :  { %603 = vmatpush3.msra.mxu0 %v370_v5 }
 0x149   :  { %604 = vmatprep.subr.mxu0 %v748_v0  ;;  %v488_v0 = vld [vmem:[%s899_s6] ss:$0 sm:$0xff] }
 0x14a   :  { %605 = vmatpush3.msra.mxu0 %v369_v6 }
 0x14b   :  { %v629_v52 = vpop.eup %628 }
 0x14c   :  { %v631_v53 = vpop.eup %630  ;;  %v266_v54 = vxor.u32 2147483648, %v629_v52 }
 0x14d   :  { %v263_v55 = vxor.u32 2147483648, %v631_v53 }
 0x14e   :  { %v267_v56 = vsel %vm265_vm11, %v266_v54, %v631_v53 }
 0x14f   :  { %v264_v57 = vsel %vm262_vm12, %v629_v52, %v263_v55 }
 0x150   :  { %v268_v34 = vsel %vm261_vm13, %v264_v57, %v267_v56 }
 0x151   :  { %v269_v58 = vsel %vm258_vm14, nan, %v268_v34 }
 0x152   :  { %572 = vmatmul.mubr.f32.vlgmr.msra.gmra.mxu1 %v269_v58 }
 0x212   :  { %v359_v8 = vpop.f32.mrf.mxu1 }
 0x213   :  { %v360_v9 = vadd.f32 %v486_v7, %v359_v8 }
 0x214   :  { %v573_v10 = vpop.f32.mrf.mxu1 }
 0x215   :  { %v364_v11 = vmin.f32 %v360_v9, 0.0  ;;  %vm363_vm15 = vcmp.gt.f32.partialorder %v360_v9, 0.0 }
 0x217   :  { %v365_v12 = vmul.f32 1.442695, %v364_v11 }
 0x219   :  { %632 = vpow2.f32 %v365_v12 }
 0x226   :  { %v633_v13 = vpop.eup %632 }
 0x227   :  { %v487_v14 = vadd.f32 -1.0, %v633_v13 }
 0x229   :  { %v368_v15 = vsel %vm363_vm15, %v360_v9, %v487_v14 }
 0x22a   :  { %607 = vmatmul.mubr.f32.vlgmr.msra.gmra.mxu0 %v368_v15 }
 0x2ea   :  { %v458_v16 = vpop.f32.mrf.mxu0 }
 0x2eb   :  { %v459_v17 = vadd.f32 %v488_v0, %v458_v16 }
 0x2ec   :  { %v608_v18 = vpop.f32.mrf.mxu0 }
 0x2ed   :  { %462 = vst [vmem:[#allocation10] sm:$0xff] %v459_v17 }
 0x2ee   :  { %725 = shalt.err (!%p722_p10)
}
 0x2ef   :  { %472 = dma.vmem_to_hbm [thread:$0]  %s470_s25, 128, %s900_s7, [#allocation4]  }
 0x2f0   :  { %740 = dma.done.wait [#allocation4], 128  }
 0x2f1   :  { %741 = vsyncadd [#allocation4], 4294967168 }
 0x2f2   :  { %476 = vsyncpa [#allocation3], 1 }
 0x2f3   :  { %477 = vsyncpa [#allocation6], 1 }
 0x2f4   :  { %478 = vsyncpa [#allocation9], 1 }
 0x2f5   :  { %479 = vsyncpa [#allocation4], 1 }

</bundles_post_ra>
